<compile_context>
chip_gen: v5e
topology: v5e:2x2
jax: 0.10.0
libtpu: 0.0.40
codegen_flags: <defaults>
</compile_context>

<pallas_src>
import functools

import jax
import jax.numpy as jnp
from jax.experimental import pallas as pl
from jax.experimental.pallas import tpu as pltpu


# ----------------------------------------------------------------------------- helpers


@functools.lru_cache(maxsize=None)
def _roll_shifts_right():
    """True if pltpu.roll(x, +1, axis=-1) behaves like jnp.roll (data moves to higher
    indices).  Probed once with a tiny kernel so we do not depend on the convention."""
    try:
        def k(x_ref, o_ref):
            o_ref[...] = pltpu.roll(x_ref[...], 1, 1)

        x = jax.lax.broadcasted_iota(jnp.int32, (8, 128), 1)
        y = pl.pallas_call(
            k, out_shape=jax.ShapeDtypeStruct((8, 128), jnp.int32))(x)
        return bool(y[0, 1] == 0)
    except Exception:
        return True  # jnp.roll convention (the documented / tested behavior)


def _shift_right_lanes(z, s, TL, roll_right):
    """Return z[..., (t - s) mod TL] along the last axis (causal right shift w/ wrap)."""
    amt = s % TL
    if amt == 0:
        return z
    if TL % 128 == 0:
        # XLU lane rotate — free-ish slot, no vector-store copies.
        return pltpu.roll(z, amt if roll_right else (TL - amt), 1)
    # Tiny / lane-unaligned tiles (TL < 128): concat-of-slices is cheap and always lowers.
    return jnp.concatenate([z[:, TL - amt:], z[:, :TL - amt]], axis=1)


def _vmem_capacity_bytes():
    try:
        info = pltpu.get_tpu_info()
        cap = getattr(info, "vmem_capacity_bytes", None)
        if cap:
            return int(cap)
    except Exception:
        pass
    return 64 * 1024 * 1024  # conservative (v7x-sized) fallback


def _choose_tiles(N, C, L, K, pad, itemsize):
    """Pick (NB, TL, vmem_limit) from the device's actual VMEM capacity."""
    cap = _vmem_capacity_bytes()
    vmem_limit = min((cap * 3) // 4, 100 * 1024 * 1024)   # 96 MiB v5e/v6e, 48 MiB v7x
    budget = (vmem_limit * 3) // 5                         # headroom for dbl-buffer/spills

    if L % 128 == 0:
        tl_cands = [t for t in (8192, 4096, 2048, 1024, 512, 256, 128)
                    if t <= L and L % t == 0 and t >= pad]
    else:
        tl_cands = []
    if not tl_cands:
        # TODO(synk): no remainder-tile support — unaligned L falls back to one tile.
        tl_cands = [L]
    nb_cands = [nb for nb in (16, 8, 4, 2, 1) if nb <= N and N % nb == 0] or [1]

    def footprint(nb, tl):
        io = 4 * nb * C * tl * itemsize                 # double-buffered in + out blocks
        wb = 2 * (K * C * C * 4 + C * 128 * 4)          # weights + bias (double-buffered)
        carry = nb * C * max(pad, 1) * 4                # carry scratch
        tmp = (K + 3) * C * tl * 4                      # f32 temporaries / spill headroom
        return io + wb + carry + tmp

    best = None
    for tl in tl_cands:
        for nb in nb_cands:
            if footprint(nb, tl) > budget:
                continue
            key = (nb * tl, tl)
            if best is None or key > best[0]:
                best = (key, nb, tl)
    if best is None:
        return 1, tl_cands[-1], vmem_limit
    return best[1], best[2], vmem_limit


# ------------------------------------------------------------------------------ kernel


def _resblock_kernel(x_ref, w_ref, b_ref, o_ref, carry_ref, *,
                     K, dil, pad, NB, TL, multi_tile, roll_right):
    # x_ref     : (NB, C, TL)      input tile (NCL)
    # w_ref     : (K, C, C)        w_ref[k] = W_pt[:, :, k]
    # b_ref     : (C, 128)         f32 lane-broadcast bias
    # o_ref     : (NB, C, TL)      output tile
    # carry_ref : (NB, C, max(pad,1)) f32  pre-multiplied head carry for the next L tile
    lt = pl.program_id(1)
    C = x_ref.shape[1]
    f32 = jnp.float32

    bias = b_ref[:, 0:1].astype(f32)                       # (C, 1), broadcasts over lanes
    need_carry = multi_tile and pad > 0
    if pad > 0:
        lane = jax.lax.broadcasted_iota(jnp.int32, (C, TL), 1)
    if need_carry:
        lane_h = jax.lax.broadcasted_iota(jnp.int32, (C, pad), 1)

    for b in range(NB):                                    # unrolled; NB is small
        x_b = x_ref[b]                                     # (C, TL)
        xr = jnp.maximum(x_b, 0.0).astype(w_ref.dtype)     # relu(x) at matmul dtype

        # Tap K-1 has zero causal shift: plain MXU matmul on the unshifted tile.
        conv = jnp.dot(w_ref[K - 1], xr, preferred_element_type=f32)

        head_pieces = []
        for k in range(K - 1):
            s = pad - k * dil                              # causal right shift (> 0)
            z = jnp.dot(w_ref[k], xr, preferred_element_type=f32)
            zr = _shift_right_lanes(z, s, TL, roll_right)  # z[(t - s) mod TL]
            conv = conv + jnp.where(lane >= s, zr, 0.0)    # mask wrapped head lanes
            if need_carry:
                head_pieces.append((s, zr[:, :pad]))       # tiny (C, pad) slice only
        conv = conv + bias

        o_ref[b] = x_b + jnp.maximum(conv, 0.0).astype(x_b.dtype)

        if need_carry:
            x_head = x_b[:, :pad]
            conv_head = conv[:, :pad]

            # Head fix: lanes t < pad are missing the previous tile's contribution,
            # which was pre-multiplied and stashed in carry_ref by the previous L step.
            @pl.when(lt > 0)
            def _():
                fixed = conv_head + carry_ref[b]
                o_ref[b, :, :pad] = x_head + jnp.maximum(fixed, 0.0).astype(x_head.dtype)

            # Carry for the next L tile: sum of each tap's wrapped tail.
            new_carry = jnp.zeros((C, pad), f32)
            for s, piece in head_pieces:
                new_carry = new_carry + jnp.where(lane_h < s, piece, 0.0)
            carry_ref[b] = new_carry


# ----------------------------------------------------------------------------- wrapper


def resblock_pallas(x_ncl, w_pt, b_pt, dil, *, tl=None, nb=None):
    """x_ncl: (N, C, L) NCL like PyTorch.  w_pt: (C_out, C_in, K).  b_pt: (C_out,)."""
    N, C, L = x_ncl.shape
    C_out, C_in, K = w_pt.shape
    assert C_out == C and C_in == C and b_pt.shape == (C,)
    assert dil >= 1
    pad = (K - 1) * dil
    itemsize = jnp.dtype(x_ncl.dtype).itemsize

    NB_auto, TL_auto, vmem_limit = _choose_tiles(N, C, L, K, pad, itemsize)
    TL = int(tl) if tl is not None else TL_auto
    NB = int(nb) if nb is not None else NB_auto
    assert L % TL == 0 and N % NB == 0
    n_lt = L // TL
    multi_tile = n_lt > 1
    if multi_tile:
        # Halo carry only spans one tile back, and blocks must be lane-aligned.
        assert TL % 128 == 0 and TL >= pad

    w_kcc = jnp.transpose(w_pt, (2, 0, 1))                              # (K, C_out, C_in)
    b_wide = jnp.broadcast_to(b_pt.astype(jnp.float32)[:, None], (C, 128))

    roll_right = _roll_shifts_right() if K > 1 else True
    kernel = functools.partial(_resblock_kernel, K=K, dil=dil, pad=pad,
                               NB=NB, TL=TL, multi_tile=multi_tile,
                               roll_right=roll_right)

    flops = 2 * N * C * C * K * L + 4 * N * C * L
    bytes_accessed = (2 * N * C * L * itemsize
                      + K * C * C * jnp.dtype(w_pt.dtype).itemsize
                      + C * 128 * 4)

    return pl.pallas_call(
        kernel,
        out_shape=jax.ShapeDtypeStruct((N, C, L), x_ncl.dtype),
        grid_spec=pltpu.PrefetchScalarGridSpec(
            num_scalar_prefetch=0,
            # L axis MUST be innermost & sequential (carry scratch dependency).
            grid=(N // NB, n_lt),
            in_specs=[
                pl.BlockSpec((NB, C, TL), lambda n, l: (n, 0, l)),
                pl.BlockSpec((K, C, C), lambda n, l: (0, 0, 0)),
                pl.BlockSpec((C, 128), lambda n, l: (0, 0)),
            ],
            out_specs=pl.BlockSpec((NB, C, TL), lambda n, l: (n, 0, l)),
            scratch_shapes=[pltpu.VMEM((NB, C, max(pad, 1)), jnp.float32)],
        ),
        compiler_params=pltpu.CompilerParams(
            dimension_semantics=("parallel", "arbitrary"),
            vmem_limit_bytes=vmem_limit,
        ),
        cost_estimate=pl.CostEstimate(
            flops=flops, transcendentals=0, bytes_accessed=bytes_accessed),
    )(x_ncl, w_kcc, b_wide)


def resblock_reference(x_ncl, w_pt, b_pt, dil):
    """Pure-JAX reference mirroring the PyTorch module (for validation)."""
    N, C, L = x_ncl.shape
    K = w_pt.shape[2]
    pad = (K - 1) * dil
    xr = jnp.maximum(x_ncl, 0.0)
    xr_pad = jnp.pad(xr, ((0, 0), (0, 0), (pad, 0)))
    y = jnp.broadcast_to(b_pt[None, :, None], (N, C, L)).astype(jnp.float32)
    for k in range(K):
        y = y + jnp.einsum("oc,ncl->nol", w_pt[:, :, k],
                           xr_pad[:, :, k * dil:k * dil + L])
    return x_ncl + jnp.maximum(y, 0.0).astype(x_ncl.dtype)


if __name__ == "__main__":
    def make_case(key, N, C, L, K):
        kx, kw, kb = jax.random.split(key, 3)
        x = jax.random.normal(kx, (N, C, L), dtype=jnp.float32)
        bound = 1.0 / ((C * K) ** 0.5)
        w = jax.random.uniform(kw, (C, C, K), dtype=jnp.float32,
                               minval=-bound, maxval=bound)
        b = jax.random.uniform(kb, (C,), dtype=jnp.float32,
                               minval=-bound, maxval=bound)
        return x, w, b

    key = jax.random.PRNGKey(0)
    k1, k2, k3 = jax.random.split(key, 3)

    # Case 1: ResBlock(channels=8, kernel=3, dil=2), input (N=2, C=8, L=16) — single tile.
    x1, w1, b1 = make_case(k1, 2, 8, 16, 3)
    out1 = jax.block_until_ready(resblock_pallas(x1, w1, b1, 2))
    ref1 = resblock_reference(x1, w1, b1, 2)
    assert out1.shape == x1.shape
    assert jnp.allclose(out1, ref1, atol=1e-5, rtol=1e-5), "case-1 mismatch"

    # Case 2: multi-L-tile carry path (L=256 as two 128-tiles, NB=2).
    x2, w2, b2 = make_case(k2, 2, 8, 256, 3)
    out2 = jax.block_until_ready(resblock_pallas(x2, w2, b2, 2, tl=128))
    ref2 = resblock_reference(x2, w2, b2, 2)
    assert jnp.allclose(out2, ref2, atol=1e-5, rtol=1e-5), "case-2 mismatch"

    # Case 3: K=4, dil=3 (pad=9), three L tiles, NB=1 — exercises cross-batch carry reset.
    x3, w3, b3 = make_case(k3, 2, 16, 384, 4)
    out3 = jax.block_until_ready(resblock_pallas(x3, w3, b3, 3, tl=128, nb=1))
    ref3 = resblock_reference(x3, w3, b3, 3)
    assert jnp.allclose(out3, ref3, atol=1e-5, rtol=1e-5), "case-3 mismatch"

    print("KERNEL_OK")
</pallas_src>

<mosaic_0001>
module attributes {stable_mosaic.version = 11 : i64} {
  func.func @k(%arg0: memref<8x128xi32, #tpu.memory_space<vmem>>, %arg1: memref<8x128xi32, #tpu.memory_space<vmem>>) attributes {dimension_semantics = [], scalar_prefetch = 0 : i64, scratch_operands = 0 : i64, tpu.core_type = #tpu.core_type<tc>} {
    %c0 = arith.constant 0 : index
    %c0_0 = arith.constant 0 : index
    %0 = vector.load %arg0[%c0, %c0_0] : memref<8x128xi32, #tpu.memory_space<vmem>>, vector<8x128xi32>
    %c1_i32 = arith.constant 1 : i32
    %1 = tpu.dynamic_rotate %0 by %c1_i32 dim 1 : vector<8x128xi32>, i32 -> vector<8x128xi32>
    %c0_1 = arith.constant 0 : index
    %c0_2 = arith.constant 0 : index
    %2 = vector.load %arg1[%c0_1, %c0_2] : memref<8x128xi32, #tpu.memory_space<vmem>>, vector<8x128xi32>
    tpu.vector_store %arg1[%c0_1, %c0_2], %1 {strides = array<i32>} : memref<8x128xi32, #tpu.memory_space<vmem>>, vector<8x128xi32>,
    return
  }
}

module attributes {stable_mosaic.version = 11 : i64} {
  func.func @_resblock_kernel(%arg0: i32, %arg1: i32, %arg2: memref<2x8x16xf32, #tpu.memory_space<vmem>>, %arg3: memref<3x8x8xf32, #tpu.memory_space<vmem>>, %arg4: memref<8x128xf32, #tpu.memory_space<vmem>>, %arg5: memref<2x8x16xf32, #tpu.memory_space<vmem>>, %arg6: memref<2x8x4xf32, #tpu.memory_space<vmem>>) attributes {dimension_semantics = [#tpu.dimension_semantics<parallel>, #tpu.dimension_semantics<arbitrary>], iteration_bounds = array<i64: 1, 1>, scalar_prefetch = 0 : i64, scratch_operands = 1 : i64, tpu.core_type = #tpu.core_type<tc>, window_params = [{transform_indices = @transform_0, window_bounds = array<i64: 2, 8, 16>}, {pipeline_mode = #tpu.pipeline_mode<synchronous>, transform_indices = @transform_1, window_bounds = array<i64: 3, 8, 8>}, {pipeline_mode = #tpu.pipeline_mode<synchronous>, transform_indices = @transform_2, window_bounds = array<i64: 8, 128>}, {transform_indices = @transform_3, window_bounds = array<i64: 2, 8, 16>}]} {
    %c0 = arith.constant 0 : index
    %c0_0 = arith.constant 0 : index
    %0 = vector.load %arg4[%c0, %c0_0] : memref<8x128xf32, #tpu.memory_space<vmem>>, vector<8x1xf32>
    %1 = tpu.iota {dimensions = array<i32: 1>} : vector<8x16xi32>
    %c0_1 = arith.constant 0 : index
    %c0_2 = arith.constant 0 : index
    %c0_3 = arith.constant 0 : index
    %2 = vector.load %arg2[%c0_1, %c0_2, %c0_3] : memref<2x8x16xf32, #tpu.memory_space<vmem>>, vector<1x8x16xf32>
    %3 = vector.shape_cast %2 : vector<1x8x16xf32> to vector<8x16xf32>
    %cst = arith.constant 0.000000e+00 : f32
    %4 = vector.broadcast %cst : f32 to vector<8x16xf32>
    %5 = arith.maximumf %3, %4 : vector<8x16xf32>
    %c2 = arith.constant 2 : index
    %c0_4 = arith.constant 0 : index
    %c0_5 = arith.constant 0 : index
    %6 = vector.load %arg3[%c2, %c0_4, %c0_5] : memref<3x8x8xf32, #tpu.memory_space<vmem>>, vector<1x8x8xf32>
    %7 = vector.shape_cast %6 : vector<1x8x8xf32> to vector<8x8xf32>
    %cst_6 = arith.constant dense<0.000000e+00> : vector<8x16xf32>
    %8 = tpu.matmul %7, %5, %cst_6 {dimension_numbers = #tpu.dot_dimension_numbers<[1], [0], [0], [1], [0, 0, 1, 1], [], []>} : vector<8x8xf32>, vector<8x16xf32>, vector<8x16xf32> -> vector<8x16xf32>
    %c0_7 = arith.constant 0 : index
    %c0_8 = arith.constant 0 : index
    %c0_9 = arith.constant 0 : index
    %9 = vector.load %arg3[%c0_7, %c0_8, %c0_9] : memref<3x8x8xf32, #tpu.memory_space<vmem>>, vector<1x8x8xf32>
    %10 = vector.shape_cast %9 : vector<1x8x8xf32> to vector<8x8xf32>
    %cst_10 = arith.constant dense<0.000000e+00> : vector<8x16xf32>
    %11 = tpu.matmul %10, %5, %cst_10 {dimension_numbers = #tpu.dot_dimension_numbers<[1], [0], [0], [1], [0, 0, 1, 1], [], []>} : vector<8x8xf32>, vector<8x16xf32>, vector<8x16xf32> -> vector<8x16xf32>
    %12 = vector.extract_strided_slice %11 {offsets = [0, 12], sizes = [8, 4], strides = [1, 1]} : vector<8x16xf32> to vector<8x4xf32>
    %13 = vector.extract_strided_slice %11 {offsets = [0, 0], sizes = [8, 12], strides = [1, 1]} : vector<8x16xf32> to vector<8x12xf32>
    %14 = tpu.concatenate %12, %13 in 1 : vector<8x4xf32>, vector<8x12xf32> -> vector<8x16xf32>
    %c4_i32 = arith.constant 4 : i32
    %15 = vector.broadcast %c4_i32 : i32 to vector<8x16xi32>
    %16 = arith.cmpi sge, %1, %15 : vector<8x16xi32>
    %cst_11 = arith.constant 0.000000e+00 : f32
    %17 = vector.broadcast %cst_11 : f32 to vector<8x16xf32>
    %18 = arith.select %16, %14, %17 : vector<8x16xi1>, vector<8x16xf32>
    %19 = arith.addf %8, %18 : vector<8x16xf32>
    %c1 = arith.constant 1 : index
    %c0_12 = arith.constant 0 : index
    %c0_13 = arith.constant 0 : index
    %20 = vector.load %arg3[%c1, %c0_12, %c0_13] : memref<3x8x8xf32, #tpu.memory_space<vmem>>, vector<1x8x8xf32>
    %21 = vector.shape_cast %20 : vector<1x8x8xf32> to vector<8x8xf32>
    %cst_14 = arith.constant dense<0.000000e+00> : vector<8x16xf32>
    %22 = tpu.matmul %21, %5, %cst_14 {dimension_numbers = #tpu.dot_dimension_numbers<[1], [0], [0], [1], [0, 0, 1, 1], [], []>} : vector<8x8xf32>, vector<8x16xf32>, vector<8x16xf32> -> vector<8x16xf32>
    %23 = vector.extract_strided_slice %22 {offsets = [0, 14], sizes = [8, 2], strides = [1, 1]} : vector<8x16xf32> to vector<8x2xf32>
    %24 = vector.extract_strided_slice %22 {offsets = [0, 0], sizes = [8, 14], strides = [1, 1]} : vector<8x16xf32> to vector<8x14xf32>
    %25 = tpu.concatenate %23, %24 in 1 : vector<8x2xf32>, vector<8x14xf32> -> vector<8x16xf32>
    %c2_i32 = arith.constant 2 : i32
    %26 = vector.broadcast %c2_i32 : i32 to vector<8x16xi32>
    %27 = arith.cmpi sge, %1, %26 : vector<8x16xi32>
    %cst_15 = arith.constant 0.000000e+00 : f32
    %28 = vector.broadcast %cst_15 : f32 to vector<8x16xf32>
    %29 = arith.select %27, %25, %28 : vector<8x16xi1>, vector<8x16xf32>
    %30 = arith.addf %19, %29 : vector<8x16xf32>
    %31 = vector.broadcast %0 : vector<8x1xf32> to vector<8x16xf32>
    %32 = arith.addf %30, %31 : vector<8x16xf32>
    %cst_16 = arith.constant 0.000000e+00 : f32
    %33 = vector.broadcast %cst_16 : f32 to vector<8x16xf32>
    %34 = arith.maximumf %32, %33 : vector<8x16xf32>
    %35 = arith.addf %3, %34 : vector<8x16xf32>
    %c0_17 = arith.constant 0 : index
    %c0_18 = arith.constant 0 : index
    %c0_19 = arith.constant 0 : index
    %36 = vector.load %arg5[%c0_17, %c0_18, %c0_19] : memref<2x8x16xf32, #tpu.memory_space<vmem>>, vector<1x8x16xf32>
    %37 = vector.shape_cast %36 : vector<1x8x16xf32> to vector<8x16xf32>
    %38 = vector.shape_cast %35 : vector<8x16xf32> to vector<1x8x16xf32>
    tpu.vector_store %arg5[%c0_17, %c0_18, %c0_19], %38 {strides = array<i32>} : memref<2x8x16xf32, #tpu.memory_space<vmem>>, vector<1x8x16xf32>,
    %c1_20 = arith.constant 1 : index
    %c0_21 = arith.constant 0 : index
    %c0_22 = arith.constant 0 : index
    %39 = vector.load %arg2[%c1_20, %c0_21, %c0_22] : memref<2x8x16xf32, #tpu.memory_space<vmem>>, vector<1x8x16xf32>
    %40 = vector.shape_cast %39 : vector<1x8x16xf32> to vector<8x16xf32>
    %cst_23 = arith.constant 0.000000e+00 : f32
    %41 = vector.broadcast %cst_23 : f32 to vector<8x16xf32>
    %42 = arith.maximumf %40, %41 : vector<8x16xf32>
    %c2_24 = arith.constant 2 : index
    %c0_25 = arith.constant 0 : index
    %c0_26 = arith.constant 0 : index
    %43 = vector.load %arg3[%c2_24, %c0_25, %c0_26] : memref<3x8x8xf32, #tpu.memory_space<vmem>>, vector<1x8x8xf32>
    %44 = vector.shape_cast %43 : vector<1x8x8xf32> to vector<8x8xf32>
    %cst_27 = arith.constant dense<0.000000e+00> : vector<8x16xf32>
    %45 = tpu.matmul %44, %42, %cst_27 {dimension_numbers = #tpu.dot_dimension_numbers<[1], [0], [0], [1], [0, 0, 1, 1], [], []>} : vector<8x8xf32>, vector<8x16xf32>, vector<8x16xf32> -> vector<8x16xf32>
    %c0_28 = arith.constant 0 : index
    %c0_29 = arith.constant 0 : index
    %c0_30 = arith.constant 0 : index
    %46 = vector.load %arg3[%c0_28, %c0_29, %c0_30] : memref<3x8x8xf32, #tpu.memory_space<vmem>>, vector<1x8x8xf32>
    %47 = vector.shape_cast %46 : vector<1x8x8xf32> to vector<8x8xf32>
    %cst_31 = arith.constant dense<0.000000e+00> : vector<8x16xf32>
    %48 = tpu.matmul %47, %42, %cst_31 {dimension_numbers = #tpu.dot_dimension_numbers<[1], [0], [0], [1], [0, 0, 1, 1], [], []>} : vector<8x8xf32>, vector<8x16xf32>, vector<8x16xf32> -> vector<8x16xf32>
    %49 = vector.extract_strided_slice %48 {offsets = [0, 12], sizes = [8, 4], strides = [1, 1]} : vector<8x16xf32> to vector<8x4xf32>
    %50 = vector.extract_strided_slice %48 {offsets = [0, 0], sizes = [8, 12], strides = [1, 1]} : vector<8x16xf32> to vector<8x12xf32>
    %51 = tpu.concatenate %49, %50 in 1 : vector<8x4xf32>, vector<8x12xf32> -> vector<8x16xf32>
    %c4_i32_32 = arith.constant 4 : i32
    %52 = vector.broadcast %c4_i32_32 : i32 to vector<8x16xi32>
    %53 = arith.cmpi sge, %1, %52 : vector<8x16xi32>
    %cst_33 = arith.constant 0.000000e+00 : f32
    %54 = vector.broadcast %cst_33 : f32 to vector<8x16xf32>
    %55 = arith.select %53, %51, %54 : vector<8x16xi1>, vector<8x16xf32>
    %56 = arith.addf %45, %55 : vector<8x16xf32>
    %c1_34 = arith.constant 1 : index
    %c0_35 = arith.constant 0 : index
    %c0_36 = arith.constant 0 : index
    %57 = vector.load %arg3[%c1_34, %c0_35, %c0_36] : memref<3x8x8xf32, #tpu.memory_space<vmem>>, vector<1x8x8xf32>
    %58 = vector.shape_cast %57 : vector<1x8x8xf32> to vector<8x8xf32>
    %cst_37 = arith.constant dense<0.000000e+00> : vector<8x16xf32>
    %59 = tpu.matmul %58, %42, %cst_37 {dimension_numbers = #tpu.dot_dimension_numbers<[1], [0], [0], [1], [0, 0, 1, 1], [], []>} : vector<8x8xf32>, vector<8x16xf32>, vector<8x16xf32> -> vector<8x16xf32>
    %60 = vector.extract_strided_slice %59 {offsets = [0, 14], sizes = [8, 2], strides = [1, 1]} : vector<8x16xf32> to vector<8x2xf32>
    %61 = vector.extract_strided_slice %59 {offsets = [0, 0], sizes = [8, 14], strides = [1, 1]} : vector<8x16xf32> to vector<8x14xf32>
    %62 = tpu.concatenate %60, %61 in 1 : vector<8x2xf32>, vector<8x14xf32> -> vector<8x16xf32>
    %c2_i32_38 = arith.constant 2 : i32
    %63 = vector.broadcast %c2_i32_38 : i32 to vector<8x16xi32>
    %64 = arith.cmpi sge, %1, %63 : vector<8x16xi32>
    %cst_39 = arith.constant 0.000000e+00 : f32
    %65 = vector.broadcast %cst_39 : f32 to vector<8x16xf32>
    %66 = arith.select %64, %62, %65 : vector<8x16xi1>, vector<8x16xf32>
    %67 = arith.addf %56, %66 : vector<8x16xf32>
    %68 = vector.broadcast %0 : vector<8x1xf32> to vector<8x16xf32>
    %69 = arith.addf %67, %68 : vector<8x16xf32>
    %cst_40 = arith.constant 0.000000e+00 : f32
    %70 = vector.broadcast %cst_40 : f32 to vector<8x16xf32>
    %71 = arith.maximumf %69, %70 : vector<8x16xf32>
    %72 = arith.addf %40, %71 : vector<8x16xf32>
    %c1_41 = arith.constant 1 : index
    %c0_42 = arith.constant 0 : index
    %c0_43 = arith.constant 0 : index
    %73 = vector.load %arg5[%c1_41, %c0_42, %c0_43] : memref<2x8x16xf32, #tpu.memory_space<vmem>>, vector<1x8x16xf32>
    %74 = vector.shape_cast %73 : vector<1x8x16xf32> to vector<8x16xf32>
    %75 = vector.shape_cast %72 : vector<8x16xf32> to vector<1x8x16xf32>
    tpu.vector_store %arg5[%c1_41, %c0_42, %c0_43], %75 {strides = array<i32>} : memref<2x8x16xf32, #tpu.memory_space<vmem>>, vector<1x8x16xf32>,
    return
  }
  func.func @transform_0(%arg0: i32, %arg1: i32) -> (i32, i32, i32) {
    %c0_i32 = arith.constant 0 : i32
    %c0_i32_0 = arith.constant 0 : i32
    return %arg0, %c0_i32, %arg1 : i32, i32, i32
  }
  func.func @transform_1(%arg0: i32, %arg1: i32) -> (i32, i32, i32) {
    %c0_i32 = arith.constant 0 : i32
    %c0_i32_0 = arith.constant 0 : i32
    %c0_i32_1 = arith.constant 0 : i32
    %c0_i32_2 = arith.constant 0 : i32
    return %c0_i32, %c0_i32_0, %c0_i32_1 : i32, i32, i32
  }
  func.func @transform_2(%arg0: i32, %arg1: i32) -> (i32, i32) {
    %c0_i32 = arith.constant 0 : i32
    %c0_i32_0 = arith.constant 0 : i32
    %c0_i32_1 = arith.constant 0 : i32
    return %c0_i32, %c0_i32_0 : i32, i32
  }
  func.func @transform_3(%arg0: i32, %arg1: i32) -> (i32, i32, i32) {
    %c0_i32 = arith.constant 0 : i32
    %c0_i32_0 = arith.constant 0 : i32
    return %arg0, %c0_i32, %arg1 : i32, i32, i32
  }
}

</mosaic_0001>

<bundles_post_ra>
// kernel: tpu_custom_call.1
= control target key start
LH: loop header
LB: loop body
LE: loop exit
PB: predicated region body
PF: predicated region fallthrough
CT: control target
= control target key end

     0   :  { %6 = vsyncpa [#allocation3], 0  ;;  %s118_s0 = inlined_call_operand.hbm [shape: s32[8,128], index: 0, kind: input, shape index: {}]   ;;  %s119_s1 = inlined_call_operand.hbm [shape: s32[8,128], index: 1, kind: output, shape index: {}]  }
   0x1   :  { %7 = vsyncpa [#allocation4], 0  ;;  %s13_s8 = sshll.u32 %s118_s0, 4  ;;  %s99_s9 = smov [#allocation2]   ;;  %s14_s8 = int_to_ptr.hbm [resolvable:$true] %s13_s8 }
   0x2   :  { %s15_s10 = sshll.u32 %s99_s9, 4  ;;  %s16_s10 = int_to_ptr.vmem [resolvable:$true] %s15_s10 }
   0x3   :  { %18 = dma.hbm_to_vmem [thread:$0]  %s14_s8, 128, %s16_s10, [#allocation3]  }
   0x4   :  { %95 = dma.done.wait [#allocation3], 128  }
   0x5   :  { %96 = vsyncadd [#allocation3], 4294967168  ;;  %v23_v0 = vld [vmem:[#allocation2] sm:$0xff]  ;;  %s100_s11 = smov 1   ;;  %s101_s12 = smov [#allocation5]  }
   0x6   :  { %24 = vrot.lane.b32.xlu0 %v23_v0, %s100_s11  ;;  %s32_s13 = sshll.u32 %s101_s12, 4  ;;  %s34_s16 = sshll.u32 %s119_s1, 4  ;;  %s33_s13 = int_to_ptr.vmem [resolvable:$true] %s32_s13  ;;  %s35_s16 = int_to_ptr.hbm [resolvable:$true] %s34_s16 }
  0x78   :  { %v25_v1 = vpop.permute.xlu0 %24 }
  0x79   :  { %26 = vst [vmem:[#allocation5] sm:$0xff] %v25_v1 }
  0x7a   :  { %37 = dma.vmem_to_hbm [thread:$0]  %s33_s13, 128, %s35_s16, [#allocation4]  }
  0x7b   :  { %97 = dma.done.wait [#allocation4], 128  }
  0x7c   :  { %98 = vsyncadd [#allocation4], 4294967168 }
  0x7d   :  { %42 = vsyncpa [#allocation3], 1 }
  0x7e   :  { %43 = vsyncpa [#allocation4], 1 }

// kernel: tpu_custom_call.1
= control target key start
LH: loop header
LB: loop body
LE: loop exit
PB: predicated region body
PF: predicated region fallthrough
CT: control target
= control target key end

     0   :  { %8 = vsyncpa [#allocation4], 0  ;;  %s479_s0 = inlined_call_operand.hbm [shape: f32[2,8,16], index: 0, kind: input, shape index: {}]   ;;  %s480_s1 = inlined_call_operand.hbm [shape: f32[3,8,8], index: 1, kind: input, shape index: {}]   ;;  %s481_s2 = inlined_call_operand.hbm [shape: f32[8,128], index: 2, kind: input, shape index: {}]   ;;  %s482_s3 = inlined_call_operand.hbm [shape: f32[2,8,16], index: 3, kind: output, shape index: {}]  }
   0x1   :  { %9 = vsyncpa [#allocation7], 0 }
   0x2   :  { %10 = vsyncpa [#allocation5], 0  ;;  %s28_s14 = sshll.u32 %s480_s1, 4  ;;  %s413_s15 = smov [#allocation6]   ;;  %s29_s14 = int_to_ptr.hbm [resolvable:$true] %s28_s14 }
   0x3   :  { %s30_s16 = sshll.u32 %s413_s15, 4  ;;  %s15_s19 = sshll.u32 %s479_s0, 4  ;;  %s31_s16 = int_to_ptr.vmem [resolvable:$true] %s30_s16  ;;  %s16_s19 = int_to_ptr.hbm [resolvable:$true] %s15_s19 }
   0x4   :  { %s414_s20 = smov 128   ;;  %s415_s21 = smov 8  }
   0x5   :  { %36 = dma.hbm_to_vmem [thread:$0]  %s29_s14, 384, %s31_s16, [#allocation7], %s414_s20, %s414_s20, %s415_s21  }
   0x6   :  { %s416_s22 = smov [#allocation3]   ;;  %s42_s1 = sshll.u32 %s481_s2, 4  ;;  %s43_s1 = int_to_ptr.hbm [resolvable:$true] %s42_s1 }
   0x7   :  { %s17_s23 = sshll.u32 %s416_s22, 4  ;;  %s417_s0 = smov [#allocation8]   ;;  %s18_s23 = int_to_ptr.vmem [resolvable:$true] %s17_s23 }
   0x8   :  { %23 = dma.hbm_to_vmem [thread:$0]  %s16_s19, 256, %s18_s23, [#allocation4], %s414_s20, %s414_s20, %s415_s21  }
   0x9   :  { %s44_s26 = sshll.u32 %s417_s0, 4  ;;  %s45_s26 = int_to_ptr.vmem [resolvable:$true] %s44_s26 }
   0xa   :  { %47 = dma.hbm_to_vmem [thread:$0]  %s43_s1, 128, %s45_s26, [#allocation7]  }
   0xb   :  { %407 = dma.done.wait [#allocation4], 256  }
   0xc   :  { %408 = vsyncadd [#allocation4], 4294967040 }
   0xd   :  { %409 = dma.done.wait [#allocation7], 512  }
   0xe   :  { %410 = vsyncadd [#allocation7], 4294966784  ;;  %v459_v0 = vld [vmem:[#allocation3] sm:$0xff]  ;;  %v461_v1 = vld [vmem:[#allocation3 + $0x8] sm:$0xff]  ;;  %vm68_vm0 = vcmask 64512   ;;  %v418_v7 = vmov 0   ;;  %v61_v15 = vlaneseq }
   0xf   :  { %v64_v2 = vmax.f32 %v459_v0, 0.0  ;;  %v175_v3 = vmax.f32 %v461_v1, 0.0  ;;  %v67_v4 = vld [vmem:[#allocation6] sm:$0xff]  ;;  %v66_v5 = vld [vmem:[#allocation6 + $0x10] sm:$0xff]  ;;  %v127_v6 = vld [vmem:[#allocation6 + $0x8] sm:$0xff]  ;;  %309 = vset.pattern.permute.xlu2 %v418_v7  ;;  %310 = vset.pattern.permute.xlu0 %v418_v7  ;;  %s419_s2 = smov 116  }
  0x10   :  { %s420_s27 = smov 4   ;;  %s421_s28 = smov 114   ;;  %v60_v13 = vld [vmem:[#allocation8] sm:$0xff]  ;;  %v62_v18 = vand.u32 127, %v61_v15  ;;  %vm158_vm1 = vcmask 15360   ;;  %vm99_vm2 = vcmask 31744  }
  0x11   :  { %87 = vmatpush.msra.mxu0 %v64_v2  ;;  %196 = vmatpush.msra.mxu3 %v175_v3  ;;  %s422_s29 = smov 2   ;;  %vm171_vm5 = vcmask 130048   ;;  %s423_s30 = smov [#allocation9]  }
  0x12   :  { %292 = vmatmul.msk.f32.vlgmr.msra.gmra.mxu0 %vm68_vm0, %v67_v4  ;;  %295 = vmatmul.msk.f32.vlgmr.msra.gmra.mxu3 %vm68_vm0, %v67_v4  ;;  %vm160_vm3 = vcmp.ge.s32.totalorder %v62_v18, 2  ;;  %vm101_vm4 = vcmp.ge.s32.totalorder %v62_v18, 4  ;;  %s276_s4 = sshll.u32 %s423_s30, 4  ;;  %s278_s7 = sshll.u32 %s482_s3, 4  ;;  %s277_s4 = int_to_ptr.vmem [resolvable:$true] %s276_s4  ;;  %s279_s7 = int_to_ptr.hbm [resolvable:$true] %s278_s7 }
  0x13   :  { %121 = vmatpush.msra.mxu1 %v64_v2  ;;  %146 = vmatpush.msra.mxu2 %v64_v2 }
  0x14   :  { %293 = vmatmul.msk.f32.vlgmr.msra.gmra.mxu1 %vm68_vm0, %v66_v5  ;;  %294 = vmatmul.msk.f32.vlgmr.msra.gmra.mxu2 %vm68_vm0, %v127_v6 }
  0x15   :  { %252 = vmatpush.msrb.mxu1 %v175_v3  ;;  %228 = vmatpush.msrb.mxu0 %v175_v3 }
  0x1a   :  { %296 = vmatmul.msk.f32.vlgmr.msrb.gmra.mxu0 %vm68_vm0, %v66_v5 }
  0x1c   :  { %297 = vmatmul.msk.f32.vlgmr.msrb.gmra.mxu1 %vm68_vm0, %v127_v6 }
  0x8f   :  { %v89_v8 = vpop.f32.mrf.mxu0 }
  0x90   :  { %93 = vrot.lane.b32.xlu0 %v89_v8, %s419_s2 }
  0x91   :  { %v123_v9 = vpop.f32.mrf.mxu1 }
  0x95   :  { %v198_v10 = vpop.f32.mrf.mxu3 }
  0x96   :  { %202 = vrot.lane.b32.xlu1 %v198_v10, %s419_s2 }
  0x97   :  { %v148_v11 = vpop.f32.mrf.mxu2  ;;  %v230_v34 = vpop.f32.mrf.mxu0 }
  0x98   :  { %96 = vrot.lane.b32.xlu0 %v89_v8, %s420_s27  ;;  %152 = vrot.lane.b32.xlu2 %v148_v11, %s421_s28 }
  0x99   :  { %v254_v12 = vpop.f32.mrf.mxu1 }
  0x9e   :  { %205 = vrot.lane.b32.xlu1 %v198_v10, %s420_s27 }
  0xa0   :  { %258 = vrot.lane.b32.xlu0 %v254_v12, %s421_s28  ;;  %155 = vrot.lane.b32.xlu2 %v148_v11, %s422_s29 }
  0xa6   :  { %261 = vrot.lane.b32.xlu1 %v254_v12, %s422_s29 }
  0xa8   :  { %165 = vperm.xlu2 %309, %v60_v13  }
  0xf2   :  { %v153_v14 = vpop.permute.xlu2 %152 }
  0xfa   :  { %v156_v17 = vpop.permute.xlu2 %155 }
  0xfb   :  { %v159_v20 = vsel %vm158_vm1, %v153_v14, %v156_v17 }
  0xfc   :  { %v161_v23 = vsel %vm160_vm3, %v159_v20, 0.0 }
 0x102   :  { %v94_v16 = vpop.permute.xlu0 %93  ;;  %v166_v26 = vpop.permute.xlu2 %165 }
 0x108   :  { %v203_v19 = vpop.permute.xlu1 %202 }
 0x10a   :  { %v97_v21 = vpop.permute.xlu0 %96 }
 0x10b   :  { %v100_v22 = vsel %vm99_vm2, %v94_v16, %v97_v21 }
 0x10c   :  { %v102_v24 = vsel %vm101_vm4, %v100_v22, 0.0 }
 0x10d   :  { %v124_v25 = vadd.f32 %v123_v9, %v102_v24 }
 0x10f   :  { %v162_v27 = vadd.f32 %v161_v23, %v124_v25 }
 0x110   :  { %v206_v28 = vpop.permute.xlu1 %205 }
 0x111   :  { %v168_v29 = vadd.f32 %v166_v26, %v162_v27  ;;  %v208_v30 = vsel %vm99_vm2, %v203_v19, %v206_v28 }
 0x112   :  { %v209_v33 = vsel %vm101_vm4, %v208_v30, 0.0  ;;  %v259_v35 = vpop.permute.xlu0 %258 }
 0x113   :  { %v169_v31 = vmax.f32 %v168_v29, 0.0  ;;  %v231_v37 = vadd.f32 %v230_v34, %v209_v33 }
 0x115   :  { %v170_v32 = vadd.f32 %v169_v31, %v459_v0 }
 0x117   :  { %172 = vst.msk [vmem:[#allocation9] sm:$0xff] %vm171_vm5, %v170_v32 }
 0x118   :  { %v262_v36 = vpop.permute.xlu1 %261 }
 0x119   :  { %v264_v38 = vsel %vm158_vm1, %v259_v35, %v262_v36 }
 0x11a   :  { %v265_v39 = vsel %vm160_vm3, %v264_v38, 0.0 }
 0x11b   :  { %v266_v40 = vadd.f32 %v265_v39, %v231_v37 }
 0x11d   :  { %v267_v41 = vadd.f32 %v266_v40, %v166_v26 }
 0x11f   :  { %v268_v42 = vmax.f32 %v267_v41, 0.0 }
 0x121   :  { %v269_v43 = vadd.f32 %v268_v42, %v461_v1 }
 0x123   :  { %271 = vst.msk [vmem:[#allocation9 + $0x8] sm:$0xff] %vm171_vm5, %v269_v43 }
 0x124   :  { %284 = dma.vmem_to_hbm [thread:$0]  %s277_s4, 256, %s279_s7, [#allocation5], %s414_s20, %s414_s20, %s415_s21  }
 0x125   :  { %411 = dma.done.wait [#allocation5], 256  }
 0x126   :  { %412 = vsyncadd [#allocation5], 4294967040 }
 0x127   :  { %289 = vsyncpa [#allocation4], 1 }
 0x128   :  { %290 = vsyncpa [#allocation7], 1 }
 0x129   :  { %291 = vsyncpa [#allocation5], 1 }

</bundles_post_ra>
